<compile_context>
chip_gen: v7x
topology: tpu7x:2x2x1
jax: 0.10.0
libtpu: 0.0.40
codegen_flags: <defaults>
</compile_context>

<pallas_src>
import jax
import jax.numpy as jnp
from jax.experimental import pallas as pl
from jax.experimental.pallas import tpu as pltpu


# ------------------------------ fixed architecture ------------------------------
# (hard-coded by the module defaults and by x.view(1, 32, -1) in forward)
INPUT_DIM = 128
EMBED_DIM = 16
HIDDEN_DIM = 32
OUTPUT_DIM = 2
BATCH = 32
LANES = 128            # 4 * HIDDEN_DIM == one lane width

# Row offsets inside the packed parameter slab (all sublane-aligned, i.e. multiples of 8).
R_W1 = 0               # (128, 128)  W_emb, cols 0:16 valid
R_B1 = 128             # (1, 128)    b_emb
R_W2 = 136             # (128, 128)  W_ih padded, rows 0:16 valid, gate cols [i|f|g|o]
R_B2 = 264             # (1, 128)    b_ih + b_hh
R_W3 = 272             # (32, 128)   [ I_32 | W_out | 0 ]
R_B3 = 304             # (1, 128)    [ 0    | b_out | 0 ]
ROWS = 312             # padded to a multiple of 8


# ---------------------------------- fused kernel ----------------------------------

def _decoder_gan_kernel(x_ref, p_ref, out_ref):
    """x_ref (32,128), p_ref (312,128) packed params, out_ref (32,128) = [h1 | relu(xy) | 0]."""
    H = HIDDEN_DIM

    x = x_ref[...]                                              # (32, 128)
    w1 = p_ref[R_W1:R_W1 + INPUT_DIM, :]                        # (128, 128)
    b1 = p_ref[R_B1:R_B1 + 1, :]                                # (1, 128)
    w2 = p_ref[R_W2:R_W2 + LANES, :]                            # (128, 128)
    b2 = p_ref[R_B2:R_B2 + 1, :]                                # (1, 128)
    w3 = p_ref[R_W3:R_W3 + H, :]                                # (32, 128)
    b3 = p_ref[R_B3:R_B3 + 1, :]                                # (1, 128)

    # mlp_embedding: Linear + ReLU (lanes 16:128 of w1/b1 are zero -> emb pad lanes stay 0).
    emb = jnp.maximum(jnp.dot(x, w1, preferred_element_type=jnp.float32) + b1, 0.0)

    # Single LSTM-cell step with h0 = c0 = 0:
    #   gates = emb @ W_ih + (b_ih + b_hh)        (the h0 @ W_hh term and f-gate are exact no-ops)
    gates = jnp.dot(emb, w2, preferred_element_type=jnp.float32) + b2   # (32,128) [i|f|g|o]

    sig = jax.nn.sigmoid(gates)                                 # full-width EUP
    th = jnp.tanh(gates)                                        # full-width EUP
    # Align g (lanes 64:96) onto i (lanes 0:32).  shift 64 == -64 (mod 128): direction-free.
    c1 = sig * pltpu.roll(th, shift=2 * H, axis=1)              # lanes 0:H hold i*g == c1
    tc1 = jnp.tanh(c1)                                          # lanes 0:H hold tanh(c1)
    h1 = sig[:, 3 * H:4 * H] * tc1[:, 0:H]                      # (32, 32) = o * tanh(c1)

    # mlp_output fused with the h-copy into one MXU pass:
    #   pre = h1 @ [ I_32 | W_out | 0 ] + [ 0 | b_out | 0 ]  ->  [ h1 | xy_pre | 0 ]
    pre = jnp.dot(h1, w3, preferred_element_type=jnp.float32) + b3      # (32, 128)
    lane = jax.lax.broadcasted_iota(jnp.int32, pre.shape, 1)
    # ReLU only on the xy lanes (>= H); h lanes pass through untouched; pad lanes stay 0.
    out_ref[...] = jnp.where(lane >= H, jnp.maximum(pre, 0.0), pre)


# ----------------------------- parameters & packing ------------------------------

def init_decoder_gan_params(key):
    """Same parameter set as the PyTorch module (pre-transposed for right-multiplication:
    Linear -> (in, out); LSTM -> (in, 4*hidden), gate column order [i|f|g|o])."""
    ks = jax.random.split(key, 9)

    def u(k, shape, bound):
        return jax.random.uniform(k, shape, jnp.float32, -bound, bound)

    emb_b = 1.0 / (INPUT_DIM ** 0.5)
    lstm_b = 1.0 / (HIDDEN_DIM ** 0.5)
    out_b = 1.0 / (HIDDEN_DIM ** 0.5)
    return {
        "we":  u(ks[0], (INPUT_DIM, EMBED_DIM), emb_b),
        "be":  u(ks[1], (1, EMBED_DIM), emb_b),
        "wih": u(ks[2], (EMBED_DIM, 4 * HIDDEN_DIM), lstm_b),
        "whh": u(ks[3], (HIDDEN_DIM, 4 * HIDDEN_DIM), lstm_b),  # dead for this forward (h0 = 0)
        "bih": u(ks[4], (1, 4 * HIDDEN_DIM), lstm_b),
        "bhh": u(ks[5], (1, 4 * HIDDEN_DIM), lstm_b),
        "wo":  u(ks[6], (HIDDEN_DIM, OUTPUT_DIM), out_b),
        "bo":  u(ks[7], (1, OUTPUT_DIM), out_b),
    }


def pack_decoder_gan_params(params):
    """One-time packing of every weight/bias into a single lane-dense f32 slab (ROWS, 128)."""
    H, O = HIDDEN_DIM, OUTPUT_DIM
    slab = jnp.zeros((ROWS, LANES), jnp.float32)
    # W_emb padded to 128 output lanes, bias row.
    slab = slab.at[R_W1:R_W1 + INPUT_DIM, 0:EMBED_DIM].set(params["we"])
    slab = slab.at[R_B1, 0:EMBED_DIM].set(params["be"][0])
    # W_ih padded to 128 input rows; b_ih + b_hh folded into one bias row.
    slab = slab.at[R_W2:R_W2 + EMBED_DIM, 0:4 * H].set(params["wih"])
    slab = slab.at[R_B2, 0:4 * H].set(params["bih"][0] + params["bhh"][0])
    # Combined output weight [ I_32 | W_out | 0 ] and bias [ 0 | b_out | 0 ].
    slab = slab.at[R_W3:R_W3 + H, 0:H].set(jnp.eye(H, dtype=jnp.float32))
    slab = slab.at[R_W3:R_W3 + H, H:H + O].set(params["wo"])
    slab = slab.at[R_B3, H:H + O].set(params["bo"][0])
    return slab


# --------------------------------- forward wrapper --------------------------------

def decoder_gan_forward(packed_params, input_features):
    """DecoderGAN.forward. Returns (hidden_states (1,32,32), xy_estimated (1,32,2))."""
    assert packed_params.shape == (ROWS, LANES)
    x2d = input_features.astype(jnp.float32).reshape(BATCH, INPUT_DIM)

    out = pl.pallas_call(
        _decoder_gan_kernel,
        out_shape=jax.ShapeDtypeStruct((BATCH, LANES), jnp.float32),
        # Grid-less call: one kernel invocation, whole (tiny) arrays resident in VMEM.
        in_specs=[
            pl.BlockSpec((BATCH, INPUT_DIM), lambda *_: (0, 0)),
            pl.BlockSpec((ROWS, LANES), lambda *_: (0, 0)),
        ],
        out_specs=pl.BlockSpec((BATCH, LANES), lambda *_: (0, 0)),
    )(x2d, packed_params)

    hidden_states = out[:, :HIDDEN_DIM].reshape(1, BATCH, HIDDEN_DIM)      # == h_n from nn.LSTM
    xy_estimated = out[:, HIDDEN_DIM:HIDDEN_DIM + OUTPUT_DIM].reshape(1, BATCH, OUTPUT_DIM)
    return hidden_states, xy_estimated


# ------------------------------- pure-JAX reference -------------------------------

def _reference_forward(params, x):
    """Straight transcription of the PyTorch forward (h0 = c0 = 0)."""
    H = HIDDEN_DIM
    emb = jnp.maximum(x @ params["we"] + params["be"], 0.0)
    gates = emb @ params["wih"] + params["bih"] + params["bhh"]            # + 0 @ whh
    i = jax.nn.sigmoid(gates[:, 0 * H:1 * H])
    g = jnp.tanh(gates[:, 2 * H:3 * H])
    o = jax.nn.sigmoid(gates[:, 3 * H:4 * H])
    h1 = o * jnp.tanh(i * g)                                               # f * c0 == 0
    xy = jnp.maximum(h1 @ params["wo"] + params["bo"], 0.0)
    return h1, xy


# ----------------------------------------- main -----------------------------------

if __name__ == "__main__":
    key = jax.random.PRNGKey(0)
    pkey, xkey = jax.random.split(key)

    params = init_decoder_gan_params(pkey)
    packed = pack_decoder_gan_params(params)

    # forward() hard-codes batch 32 via x.view(1, 32, -1); input_dim = 128.
    input_features = jax.random.normal(xkey, (BATCH, INPUT_DIM), dtype=jnp.float32)

    hidden_states, xy_estimated = decoder_gan_forward(packed, input_features)
    hidden_states = jax.block_until_ready(hidden_states)
    xy_estimated = jax.block_until_ready(xy_estimated)

    assert hidden_states.shape == (1, BATCH, HIDDEN_DIM), hidden_states.shape
    assert xy_estimated.shape == (1, BATCH, OUTPUT_DIM), xy_estimated.shape
    assert hidden_states.dtype == jnp.float32 and xy_estimated.dtype == jnp.float32
    assert bool(jnp.all(jnp.isfinite(hidden_states)))
    assert bool(jnp.all(jnp.isfinite(xy_estimated)))
    assert bool(jnp.all(xy_estimated >= 0.0))          # final ReLU

    # Numerical check against a pure-JAX transcription of the PyTorch module.
    h_ref, xy_ref = _reference_forward(params, input_features)
    assert bool(jnp.allclose(hidden_states[0], h_ref, atol=2e-2, rtol=2e-2))
    assert bool(jnp.allclose(xy_estimated[0], xy_ref, atol=2e-2, rtol=2e-2))

    print("KERNEL_OK")
</pallas_src>

<mosaic_0001>
module attributes {stable_mosaic.version = 11 : i64} {
  func.func @_decoder_gan_kernel(%arg0: memref<32x128xf32, #tpu.memory_space<vmem>>, %arg1: memref<312x128xf32, #tpu.memory_space<vmem>>, %arg2: memref<32x128xf32, #tpu.memory_space<vmem>>) attributes {dimension_semantics = [], scalar_prefetch = 0 : i64, scratch_operands = 0 : i64, tpu.core_type = #tpu.core_type<tc>} {
    %c0 = arith.constant 0 : index
    %c0_0 = arith.constant 0 : index
    %0 = vector.load %arg0[%c0, %c0_0] : memref<32x128xf32, #tpu.memory_space<vmem>>, vector<32x128xf32>
    %c0_1 = arith.constant 0 : index
    %c0_2 = arith.constant 0 : index
    %1 = vector.load %arg1[%c0_1, %c0_2] : memref<312x128xf32, #tpu.memory_space<vmem>>, vector<128x128xf32>
    %c128 = arith.constant 128 : index
    %c0_3 = arith.constant 0 : index
    %2 = vector.load %arg1[%c128, %c0_3] : memref<312x128xf32, #tpu.memory_space<vmem>>, vector<1x128xf32>
    %c136 = arith.constant 136 : index
    %c0_4 = arith.constant 0 : index
    %3 = vector.load %arg1[%c136, %c0_4] : memref<312x128xf32, #tpu.memory_space<vmem>>, vector<128x128xf32>
    %c264 = arith.constant 264 : index
    %c0_5 = arith.constant 0 : index
    %4 = vector.load %arg1[%c264, %c0_5] : memref<312x128xf32, #tpu.memory_space<vmem>>, vector<1x128xf32>
    %c272 = arith.constant 272 : index
    %c0_6 = arith.constant 0 : index
    %5 = vector.load %arg1[%c272, %c0_6] : memref<312x128xf32, #tpu.memory_space<vmem>>, vector<32x128xf32>
    %c304 = arith.constant 304 : index
    %c0_7 = arith.constant 0 : index
    %6 = vector.load %arg1[%c304, %c0_7] : memref<312x128xf32, #tpu.memory_space<vmem>>, vector<1x128xf32>
    %cst = arith.constant dense<0.000000e+00> : vector<32x128xf32>
    %7 = tpu.matmul %0, %1, %cst {dimension_numbers = #tpu.dot_dimension_numbers<[1], [0], [0], [1], [0, 0, 1, 1], [], []>} : vector<32x128xf32>, vector<128x128xf32>, vector<32x128xf32> -> vector<32x128xf32>
    %8 = vector.broadcast %2 : vector<1x128xf32> to vector<32x128xf32>
    %9 = arith.addf %7, %8 : vector<32x128xf32>
    %cst_8 = arith.constant 0.000000e+00 : f32
    %10 = vector.broadcast %cst_8 : f32 to vector<32x128xf32>
    %11 = arith.maximumf %9, %10 : vector<32x128xf32>
    %cst_9 = arith.constant dense<0.000000e+00> : vector<32x128xf32>
    %12 = tpu.matmul %11, %3, %cst_9 {dimension_numbers = #tpu.dot_dimension_numbers<[1], [0], [0], [1], [0, 0, 1, 1], [], []>} : vector<32x128xf32>, vector<128x128xf32>, vector<32x128xf32> -> vector<32x128xf32>
    %13 = vector.broadcast %4 : vector<1x128xf32> to vector<32x128xf32>
    %14 = arith.addf %12, %13 : vector<32x128xf32>
    %15 = arith.negf %14 : vector<32x128xf32>
    %16 = math.exp %15 : vector<32x128xf32>
    %cst_10 = arith.constant 1.000000e+00 : f32
    %17 = vector.broadcast %cst_10 : f32 to vector<32x128xf32>
    %18 = arith.addf %17, %16 : vector<32x128xf32>
    %19 = arith.divf %17, %18 : vector<32x128xf32>
    %20 = math.tanh %14 : vector<32x128xf32>
    %c64_i32 = arith.constant 64 : i32
    %21 = tpu.dynamic_rotate %20 by %c64_i32 dim 1 : vector<32x128xf32>, i32 -> vector<32x128xf32>
    %22 = arith.mulf %19, %21 : vector<32x128xf32>
    %23 = math.tanh %22 : vector<32x128xf32>
    %24 = vector.extract_strided_slice %19 {offsets = [0, 96], sizes = [32, 32], strides = [1, 1]} : vector<32x128xf32> to vector<32x32xf32>
    %25 = vector.extract_strided_slice %23 {offsets = [0, 0], sizes = [32, 32], strides = [1, 1]} : vector<32x128xf32> to vector<32x32xf32>
    %26 = arith.mulf %24, %25 : vector<32x32xf32>
    %cst_11 = arith.constant dense<0.000000e+00> : vector<32x128xf32>
    %27 = tpu.matmul %26, %5, %cst_11 {dimension_numbers = #tpu.dot_dimension_numbers<[1], [0], [0], [1], [0, 0, 1, 1], [], []>} : vector<32x32xf32>, vector<32x128xf32>, vector<32x128xf32> -> vector<32x128xf32>
    %28 = vector.broadcast %6 : vector<1x128xf32> to vector<32x128xf32>
    %29 = arith.addf %27, %28 : vector<32x128xf32>
    %30 = tpu.iota {dimensions = array<i32: 1>} : vector<32x128xi32>
    %c32_i32 = arith.constant 32 : i32
    %31 = vector.broadcast %c32_i32 : i32 to vector<32x128xi32>
    %32 = arith.cmpi sge, %30, %31 : vector<32x128xi32>
    %cst_12 = arith.constant 0.000000e+00 : f32
    %33 = vector.broadcast %cst_12 : f32 to vector<32x128xf32>
    %34 = arith.maximumf %29, %33 : vector<32x128xf32>
    %35 = arith.select %32, %34, %29 : vector<32x128xi1>, vector<32x128xf32>
    %c0_13 = arith.constant 0 : index
    %c0_14 = arith.constant 0 : index
    %36 = vector.load %arg2[%c0_13, %c0_14] : memref<32x128xf32, #tpu.memory_space<vmem>>, vector<32x128xf32>
    tpu.vector_store %arg2[%c0_13, %c0_14], %35 {strides = array<i32>} : memref<32x128xf32, #tpu.memory_space<vmem>>, vector<32x128xf32>,
    return
  }
}

</mosaic_0001>

<bundles_post_ra>
// kernel: tpu_custom_call.1
= control target key start
LH: loop header
LB: loop body
LE: loop exit
PB: predicated region body
PF: predicated region fallthrough
CT: control target
= control target key end

     0   :  { %7 = vsyncpa [#allocation3], 0  ;;  %s881_s0 = inlined_call_operand.hbm [shape: f32[32,128], index: 0, kind: input, shape index: {}]   ;;  %s882_s1 = inlined_call_operand.hbm [shape: f32[312,128], index: 1, kind: input, shape index: {}]   ;;  %s883_s2 = inlined_call_operand.hbm [shape: f32[32,128], index: 2, kind: output, shape index: {}]  }
   0x1   :  { %8 = vsyncpa [#allocation6], 0 }
   0x2   :  { %9 = vsyncpa [#allocation4], 0  ;;  %s809_s9 = smov [#allocation2]   ;;  %s737_s13 = scalar_lea.hbm %s881_s0, 512 }
   0x3   :  { %s15_s10 = sshll.u32 %s809_s9, 4  ;;  %p738_p0 = scmp.ne.s32.totalorder %s881_s0, %s737_s13  ;;  %s16_s10 = int_to_ptr.vmem [resolvable:$true] %s15_s10 }
   0x4   :  { %p741_p1 = scmp.lt.u32.totalorder %s737_s13, %s881_s0 }
   0x6   :  { %p743_p2 = pnand %p741_p1, %p738_p0 }
   0x8   :  { %746 = shalt.err (!%p743_p2)
}
   0x9   :  { %s747_s18 = scalar_lea.vmem %s16_s10, 512  ;;  %p752_p4 = scmp.lt.s32.totalorder %s16_s10, %s16_s10 }
   0xa   :  { %p748_p3 = scmp.ne.s32.totalorder %s16_s10, %s747_s18  ;;  %p753_p5 = scmp.lt.s32.totalorder %s747_s18, %s747_s18 }
   0xc   :  { %p754_p6 = por %p753_p5, %p752_p4 }
   0xe   :  { %p755_p7 = pnand %p754_p6, %p748_p3 }
  0x10   :  { %758 = shalt.err (!%p755_p7)
}
  0x11   :  { %s810_s19 = smov 128   ;;  %s811_s20 = smov 8  }
  0x12   :  { %21 = dma.hbm_to_vmem [thread:$0]  %s881_s0, 512, %s16_s10, [#allocation3], %s810_s19, %s810_s19, %s811_s20  }
  0x13   :  { %s812_s23 = smov [#allocation5]   ;;  %s759_s27 = scalar_lea.hbm %s882_s1, 4992 }
  0x14   :  { %s27_s24 = sshll.u32 %s812_s23, 4  ;;  %p760_p8 = scmp.ne.s32.totalorder %s882_s1, %s759_s27  ;;  %s28_s24 = int_to_ptr.vmem [resolvable:$true] %s27_s24 }
  0x15   :  { %p763_p9 = scmp.lt.u32.totalorder %s759_s27, %s882_s1 }
  0x17   :  { %p765_p10 = pnand %p763_p9, %p760_p8 }
  0x19   :  { %768 = shalt.err (!%p765_p10)
}
  0x1a   :  { %s769_s4 = scalar_lea.vmem %s28_s24, 4992  ;;  %p774_p12 = scmp.lt.s32.totalorder %s28_s24, %s28_s24 }
  0x1b   :  { %p770_p11 = scmp.ne.s32.totalorder %s28_s24, %s769_s4  ;;  %p775_p13 = scmp.lt.s32.totalorder %s769_s4, %s769_s4 }
  0x1d   :  { %p776_p0 = por %p775_p13, %p774_p12 }
  0x1f   :  { %p777_p1 = pnand %p776_p0, %p770_p11 }
  0x21   :  { %780 = shalt.err (!%p777_p1)
}
  0x22   :  { %33 = dma.hbm_to_vmem [thread:$0]  %s882_s1, 4992, %s28_s24, [#allocation6], %s810_s19, %s810_s19, %s811_s20  }
  0x23   :  { %803 = dma.done.wait [#allocation3], 512  }
  0x24   :  { %804 = vsyncadd [#allocation3], 4294966784 }
  0x25   :  { %805 = dma.done.wait [#allocation6], 4992  }
  0x26   :  { %806 = vsyncadd [#allocation6], 4294962304  ;;  %v44_v0 = vld [vmem:[#allocation5] sm:$0xff]  ;;  %v45_v1 = vld [vmem:[#allocation5 + $0x8] sm:$0xff]  ;;  %s813_s1 = smov 64   ;;  %s814_s6 = smov 96  }
  0x27   :  { %v46_v2 = vld [vmem:[#allocation5 + $0x10] sm:$0xff]  ;;  %v621_v3 = vpack.c.bf16 %v45_v1, %v44_v0  ;;  %v47_v4 = vld [vmem:[#allocation5 + $0x18] sm:$0xff]  ;;  %v48_v6 = vld [vmem:[#allocation5 + $0x20] sm:$0xff]  ;;  %s815_s7 = smov 32   ;;  %vm345_vm0 = vcmask 261120   ;;  %s816_s8 = smov [#allocation7]  }
  0x28   :  { %v625_v5 = vpack.c.bf16 %v47_v4, %v46_v2  ;;  %v49_v7 = vld [vmem:[#allocation5 + $0x28] sm:$0xff]  ;;  %v40_v9 = vld [vmem:[#allocation2] sm:$0xff]  ;;  %v50_v10 = vld [vmem:[#allocation5 + $0x30] sm:$0xff]  ;;  %s459_s9 = sshll.u32 %s816_s8, 4  ;;  %s460_s9 = int_to_ptr.vmem [resolvable:$true] %s459_s9 }
  0x29   :  { %622 = vmatprep.subr.bf16.mxu0 %v621_v3  ;;  %v629_v8 = vpack.c.bf16 %v49_v7, %v48_v6  ;;  %v51_v11 = vld [vmem:[#allocation5 + $0x38] sm:$0xff]  ;;  %563 = vmatprep.mubr.f32.mxu0 %v40_v9  ;;  %v61_v12 = vld [vmem:[#allocation5 + $0x88] sm:$0xff]  ;;  %v62_v13 = vld [vmem:[#allocation5 + $0x90] sm:$0xff]  ;;  %s781_s10 = scalar_lea.vmem %s460_s9, 512  ;;  %p786_p3 = scmp.lt.s32.totalorder %s460_s9, %s460_s9 }
  0x2a   :  { %624 = vmatpush3.bf16.msra.mxu0 %v621_v3  ;;  %v63_v14 = vld [vmem:[#allocation5 + $0x98] sm:$0xff]  ;;  %v64_v15 = vld [vmem:[#allocation5 + $0xa0] sm:$0xff]  ;;  %v653_v16 = vpack.c.bf16 %v62_v13, %v61_v12  ;;  %v633_v18 = vpack.c.bf16 %v51_v11, %v50_v10  ;;  %v65_v19 = vld [vmem:[#allocation5 + $0xa8] sm:$0xff]  ;;  %p782_p2 = scmp.ne.s32.totalorder %s460_s9, %s781_s10  ;;  %p787_p4 = scmp.lt.s32.totalorder %s781_s10, %s781_s10 }
  0x2b   :  { %626 = vmatprep.subr.bf16.mxu0 %v625_v5  ;;  %v657_v17 = vpack.c.bf16 %v64_v15, %v63_v14  ;;  %v66_v20 = vld [vmem:[#allocation5 + $0xb0] sm:$0xff]  ;;  %v52_v21 = vld [vmem:[#allocation5 + $0x40] sm:$0xff]  ;;  %v53_v22 = vld [vmem:[#allocation5 + $0x48] sm:$0xff] }
  0x2c   :  { %654 = vmatprep.subr.bf16.mxu1 %v653_v16  ;;  %v661_v23 = vpack.c.bf16 %v66_v20, %v65_v19  ;;  %v637_v24 = vpack.c.bf16 %v53_v22, %v52_v21  ;;  %v67_v25 = vld [vmem:[#allocation5 + $0xb8] sm:$0xff]  ;;  %v68_v26 = vld [vmem:[#allocation5 + $0xc0] sm:$0xff]  ;;  %v54_v27 = vld [vmem:[#allocation5 + $0x50] sm:$0xff]  ;;  %p788_p5 = por %p787_p4, %p786_p3 }
  0x2d   :  { %656 = vmatpush3.bf16.msra.mxu1 %v653_v16  ;;  %v55_v28 = vld [vmem:[#allocation5 + $0x58] sm:$0xff]  ;;  %v665_v29 = vpack.c.bf16 %v68_v26, %v67_v25  ;;  %v69_v31 = vld [vmem:[#allocation5 + $0xc8] sm:$0xff]  ;;  %v70_v32 = vld [vmem:[#allocation5 + $0xd0] sm:$0xff] }
  0x2e   :  { %628 = vmatpush3.bf16.msra.mxu0 %v625_v5  ;;  %658 = vmatprep.subr.bf16.mxu1 %v657_v17  ;;  %v641_v30 = vpack.c.bf16 %v55_v28, %v54_v27  ;;  %v56_v33 = vld [vmem:[#allocation5 + $0x60] sm:$0xff]  ;;  %v57_v34 = vld [vmem:[#allocation5 + $0x68] sm:$0xff]  ;;  %v669_v35 = vpack.c.bf16 %v70_v32, %v69_v31  ;;  %v71_v37 = vld [vmem:[#allocation5 + $0xd8] sm:$0xff]  ;;  %p789_p6 = pnand %p788_p5, %p782_p2 }
  0x2f   :  { %630 = vmatprep.subr.bf16.mxu0 %v629_v8  ;;  %v645_v36 = vpack.c.bf16 %v57_v34, %v56_v33  ;;  %v72_v38 = vld [vmem:[#allocation5 + $0xe0] sm:$0xff]  ;;  %v58_v39 = vld [vmem:[#allocation5 + $0x70] sm:$0xff]  ;;  %v59_v40 = vld [vmem:[#allocation5 + $0x78] sm:$0xff] }
  0x30   :  { %v673_v41 = vpack.c.bf16 %v72_v38, %v71_v37  ;;  %v649_v42 = vpack.c.bf16 %v59_v40, %v58_v39  ;;  %v73_v43 = vld [vmem:[#allocation5 + $0xe8] sm:$0xff]  ;;  %v74_v44 = vld [vmem:[#allocation5 + $0xf0] sm:$0xff]  ;;  %v43_v48 = vld [vmem:[#allocation2 + $0x18] sm:$0xff] }
  0x31   :  { %660 = vmatpush3.bf16.msra.mxu1 %v657_v17  ;;  %v677_v45 = vpack.c.bf16 %v74_v44, %v73_v43  ;;  %v41_v46 = vld [vmem:[#allocation2 + $0x8] sm:$0xff]  ;;  %v42_v47 = vld [vmem:[#allocation2 + $0x10] sm:$0xff]  ;;  %v75_v49 = vld [vmem:[#allocation5 + $0xf8] sm:$0xff] }
  0x32   :  { %632 = vmatpush3.bf16.msra.mxu0 %v629_v8  ;;  %662 = vmatprep.subr.bf16.mxu1 %v661_v23  ;;  %v76_v50 = vld [vmem:[#allocation5 + $0x100] sm:$0xff]  ;;  %v473_v1 = vld [vmem:[#allocation5 + $0x108] ss:$0 sm:$0xff]  ;;  %v78_v38 = vld [vmem:[#allocation5 + $0x110] sm:$0xff] }
  0x33   :  { %634 = vmatprep.subr.bf16.mxu0 %v633_v18  ;;  %v681_v51 = vpack.c.bf16 %v76_v50, %v75_v49  ;;  %v472_v52 = vld [vmem:[#allocation5 + $0x80] ss:$0 sm:$0xff]  ;;  %v79_v39 = vld [vmem:[#allocation5 + $0x118] sm:$0xff] }
  0x34   :  { %v685_v40 = vpack.c.bf16 %v79_v39, %v78_v38 }
  0x35   :  { %664 = vmatpush3.bf16.msra.mxu1 %v661_v23 }
  0x36   :  { %636 = vmatpush3.bf16.msra.mxu0 %v633_v18  ;;  %666 = vmatprep.subr.bf16.mxu1 %v665_v29 }
  0x37   :  { %638 = vmatprep.subr.bf16.mxu0 %v637_v24 }
  0x39   :  { %668 = vmatpush3.bf16.msra.mxu1 %v665_v29 }
  0x3a   :  { %640 = vmatpush3.bf16.msra.mxu0 %v637_v24  ;;  %670 = vmatprep.subr.bf16.mxu1 %v669_v35 }
  0x3b   :  { %642 = vmatprep.subr.bf16.mxu0 %v641_v30 }
  0x3d   :  { %672 = vmatpush3.bf16.msra.mxu1 %v669_v35 }
  0x3e   :  { %644 = vmatpush3.bf16.msra.mxu0 %v641_v30  ;;  %674 = vmatprep.subr.bf16.mxu1 %v673_v41 }
  0x3f   :  { %646 = vmatprep.subr.bf16.mxu0 %v645_v36 }
  0x41   :  { %676 = vmatpush3.bf16.msra.mxu1 %v673_v41 }
  0x42   :  { %648 = vmatpush3.bf16.msra.mxu0 %v645_v36  ;;  %678 = vmatprep.subr.bf16.mxu1 %v677_v45 }
  0x43   :  { %650 = vmatprep.subr.bf16.mxu0 %v649_v42 }
  0x45   :  { %680 = vmatpush3.bf16.msra.mxu1 %v677_v45  ;;  %v80_v45 = vld [vmem:[#allocation5 + $0x120] sm:$0xff] }
  0x46   :  { %652 = vmatpush3.bf16.msra.mxu0 %v649_v42  ;;  %682 = vmatprep.subr.bf16.mxu1 %v681_v51 }
  0x47   :  { %686 = vmatprep.subr.bf16.mxu0 %v685_v40 }
  0x49   :  { %564 = vmatmul.mubr.f32.vlgmr.msra.gmra.mrb[0].mxu0 %v41_v46  ;;  %684 = vmatpush3.bf16.msra.mxu1 %v681_v51  ;;  %v81_v46 = vld [vmem:[#allocation5 + $0x128] sm:$0xff] }
  0x4a   :  { %566 = vmatprep.mubr.f32.mxu0 %v42_v47  ;;  %688 = vmatpush3.bf16.msra.mxu0 %v685_v40  ;;  %v689_v47 = vpack.c.bf16 %v81_v46, %v80_v45 }
  0x4b   :  { %693 = vmatprep.subr.bf16.mxu1 %v685_v40 }
  0x4c   :  { %690 = vmatprep.subr.bf16.mxu0 %v689_v47 }
  0x4d   :  { %567 = vmatmul.mubr.f32.gmra.mrb[2].mxu0 %v43_v48 }
  0x4e   :  { %692 = vmatpush3.bf16.msra.mxu0 %v689_v47 }
 0x11c   :  { %v565_v53 = vpop.f32.mrb[0].mxu0 }
 0x11d   :  { %v159_v54 = vadd.f32 %v565_v53, %v472_v52  ;;  %v153_v55 = vpop.f32.mrb[1].mxu0 }
 0x11e   :  { %v154_v56 = vadd.f32 %v472_v52, %v153_v55 }
 0x11f   :  { %v173_v59 = vmax.f32 %v159_v54, 0.0 }
 0x120   :  { %v568_v57 = vpop.f32.mrb[2].mxu0  ;;  %v172_v58 = vmax.f32 %v154_v56, 0.0 }
 0x121   :  { %v169_v60 = vadd.f32 %v568_v57, %v472_v52  ;;  %v163_v61 = vpop.f32.mrb[3].mxu0 }
 0x122   :  { %v164_v62 = vadd.f32 %v472_v52, %v163_v61  ;;  %601 = vmatprep.mubr.f32.mxu1 %v172_v58  ;;  %v478_v61 = vld [vmem:[#allocation5 + $0x130] ss:$0 sm:$0xff] }
 0x123   :  { %602 = vmatmul.mubr.f32.vlgmr.msra.gmra.mrb[0].mxu1 %v173_v59  ;;  %v175_v0 = vmax.f32 %v169_v60, 0.0  ;;  %v439_v60 = vlaneseq }
 0x124   :  { %v174_v63 = vmax.f32 %v164_v62, 0.0  ;;  %695 = vmatpush3.bf16.msra.mxu1 %v685_v40 }
 0x125   :  { %694 = vmatprep.subr.bf16.mxu1 %v689_v47  ;;  %v440_v62 = vand.u32 127, %v439_v60 }
 0x126   :  { %604 = vmatprep.mubr.f32.mxu1 %v174_v63 }
 0x127   :  { %605 = vmatmul.mubr.f32.gmra.mrb[2].mxu1 %v175_v0  ;;  %vm441_vm1 = vcmp.ge.s32.totalorder %v440_v62, 32 }
 0x128   :  { %696 = vmatpush3.bf16.msra.mxu1 %v689_v47 }
 0x1f6   :  { %v603_v2 = vpop.f32.mrb[0].mxu1 }
 0x1f7   :  { %v252_v3 = vadd.f32 %v603_v2, %v473_v1  ;;  %v246_v4 = vpop.f32.mrb[1].mxu1 }
 0x1f8   :  { %v247_v5 = vadd.f32 %v473_v1, %v246_v4 }
 0x1f9   :  { %705 = vtanh.f32 %v252_v3  ;;  %v475_v15 = vmul.f32 -1.442695, %v252_v3 }
 0x1fa   :  { %707 = vtanh.f32 %v247_v5  ;;  %v606_v6 = vpop.f32.mrb[2].mxu1  ;;  %v474_v14 = vmul.f32 -1.442695, %v247_v5 }
 0x1fb   :  { %v262_v7 = vadd.f32 %v606_v6, %v473_v1  ;;  %v256_v8 = vpop.f32.mrb[3].mxu1 }
 0x1fc   :  { %v257_v9 = vadd.f32 %v473_v1, %v256_v8 }
 0x1fd   :  { %709 = vtanh.f32 %v262_v7  ;;  %v477_v17 = vmul.f32 -1.442695, %v262_v7 }
 0x1fe   :  { %711 = vtanh.f32 %v257_v9  ;;  %v476_v16 = vmul.f32 -1.442695, %v257_v9 }
 0x1ff   :  { %713 = vpow2.f32 %v474_v14 }
 0x200   :  { %715 = vpow2.f32 %v475_v15 }
 0x201   :  { %717 = vpow2.f32 %v476_v16 }
 0x202   :  { %719 = vpow2.f32 %v477_v17 }
 0x203   :  { %v706_v10 = vpop.eup %705 }
 0x204   :  { %v708_v11 = vpop.eup %707  ;;  %295 = vrot.lane.b32.xlu1 %v706_v10, %s813_s1 }
 0x205   :  { %293 = vrot.lane.b32.xlu0 %v708_v11, %s813_s1 }
 0x207   :  { %v710_v12 = vpop.eup %709 }
 0x208   :  { %v712_v13 = vpop.eup %711  ;;  %299 = vrot.lane.b32.xlu1 %v710_v12, %s813_s1 }
 0x209   :  { %297 = vrot.lane.b32.xlu0 %v712_v13, %s813_s1  ;;  %v714_v18 = vpop.eup %713 }
 0x20a   :  { %v716_v19 = vpop.eup %715  ;;  %v277_v20 = vadd.f32 1.0, %v714_v18 }
 0x20b   :  { %v718_v21 = vpop.eup %717  ;;  %v278_v22 = vadd.f32 1.0, %v716_v19 }
 0x20c   :  { %v720_v23 = vpop.eup %719  ;;  %721 = vrcp.f32 %v277_v20  ;;  %v279_v24 = vadd.f32 1.0, %v718_v21 }
 0x20d   :  { %723 = vrcp.f32 %v278_v22  ;;  %v280_v25 = vadd.f32 1.0, %v720_v23 }
 0x20e   :  { %725 = vrcp.f32 %v279_v24 }
 0x20f   :  { %727 = vrcp.f32 %v280_v25 }
 0x216   :  { %v722_v27 = vpop.eup %721 }
 0x217   :  { %v724_v29 = vpop.eup %723 }
 0x218   :  { %v726_v32 = vpop.eup %725 }
 0x219   :  { %v728_v36 = vpop.eup %727 }
 0x276   :  { %v296_v26 = vpop.permute.xlu1 %295 }
 0x277   :  { %v294_v28 = vpop.permute.xlu0 %293  ;;  %v302_v31 = vmul.f32 %v724_v29, %v296_v26 }
 0x278   :  { %v301_v30 = vmul.f32 %v722_v27, %v294_v28 }
 0x27a   :  { %729 = vtanh.f32 %v301_v30  ;;  %v300_v33 = vpop.permute.xlu1 %299 }
 0x27b   :  { %v298_v34 = vpop.permute.xlu0 %297  ;;  %731 = vtanh.f32 %v302_v31  ;;  %v304_v37 = vmul.f32 %v728_v36, %v300_v33 }
 0x27c   :  { %v303_v35 = vmul.f32 %v726_v32, %v298_v34 }
 0x27e   :  { %733 = vtanh.f32 %v303_v35 }
 0x27f   :  { %735 = vtanh.f32 %v304_v37 }
 0x284   :  { %v730_v41 = vpop.eup %729 }
 0x285   :  { %313 = vrot.lane.b32.xlu0 %v730_v41, %s814_s6  ;;  %v732_v42 = vpop.eup %731 }
 0x288   :  { %v734_v43 = vpop.eup %733 }
 0x289   :  { %317 = vrot.lane.b32.xlu1 %v734_v43, %s814_s6  ;;  %315 = vrot.lane.b32.xlu0 %v732_v42, %s814_s6  ;;  %v736_v44 = vpop.eup %735 }
 0x28d   :  { %319 = vrot.lane.b32.xlu1 %v736_v44, %s814_s6 }
 0x2f7   :  { %v314_v48 = vpop.permute.xlu0 %313 }
 0x2f8   :  { %v325_v49 = vmul.f32 %v722_v27, %v314_v48 }
 0x2fa   :  { %337 = vrot.lane.b32.xlu0 %v325_v49, %s815_s7 }
 0x2fb   :  { %v318_v50 = vpop.permute.xlu1 %317  ;;  %v316_v51 = vpop.permute.xlu0 %315 }
 0x2fc   :  { %v327_v52 = vmul.f32 %v726_v32, %v318_v50  ;;  %v326_v53 = vmul.f32 %v724_v29, %v316_v51 }
 0x2fe   :  { %341 = vrot.lane.b32.xlu1 %v327_v52, %s815_s7  ;;  %339 = vrot.lane.b32.xlu0 %v326_v53, %s815_s7 }
 0x2ff   :  { %v320_v54 = vpop.permute.xlu1 %319 }
 0x300   :  { %v328_v55 = vmul.f32 %v728_v36, %v320_v54 }
 0x302   :  { %343 = vrot.lane.b32.xlu1 %v328_v55, %s815_s7 }
 0x36c   :  { %v338_v56 = vpop.permute.xlu0 %337 }
 0x36d   :  { %615 = vmatprep.mubr.msk.f32.mxu0 %vm345_vm0, %v338_v56 }
 0x370   :  { %v342_v57 = vpop.permute.xlu1 %341  ;;  %v340_v58 = vpop.permute.xlu0 %339 }
 0x371   :  { %616 = vmatmul.mubr.msk.f32.vlgmr.msra.gmra.mrb[4].mxu0 %vm345_vm0, %v340_v58  ;;  %618 = vmatprep.mubr.msk.f32.mxu1 %vm345_vm0, %v342_v57 }
 0x374   :  { %v344_v59 = vpop.permute.xlu1 %343 }
 0x375   :  { %619 = vmatmul.mubr.msk.f32.vlgmr.msra.gmra.mrb[4].mxu1 %vm345_vm0, %v344_v59 }
 0x444   :  { %v617_v63 = vpop.f32.mrb[4].mxu0 }
 0x445   :  { %v426_v0 = vadd.f32 %v617_v63, %v478_v61  ;;  %v420_v1 = vpop.f32.mrb[5].mxu0 }
 0x446   :  { %v421_v2 = vadd.f32 %v478_v61, %v420_v1 }
 0x447   :  { %v443_v3 = vmax.f32 %v426_v0, 0.0 }
 0x448   :  { %v442_v4 = vmax.f32 %v421_v2, 0.0  ;;  %v620_v5 = vpop.f32.mrb[4].mxu1 }
 0x449   :  { %v447_v6 = vsel %vm441_vm1, %v443_v3, %v426_v0  ;;  %v436_v7 = vadd.f32 %v620_v5, %v478_v61  ;;  %v430_v8 = vpop.f32.mrb[5].mxu1 }
 0x44a   :  { %451 = vst [vmem:[#allocation7 + $0x8] sm:$0xff] %v447_v6  ;;  %v446_v9 = vsel %vm441_vm1, %v442_v4, %v421_v2  ;;  %v431_v10 = vadd.f32 %v478_v61, %v430_v8 }
 0x44b   :  { %450 = vst [vmem:[#allocation7] sm:$0xff] %v446_v9  ;;  %v445_v11 = vmax.f32 %v436_v7, 0.0 }
 0x44c   :  { %v444_v12 = vmax.f32 %v431_v10, 0.0 }
 0x44d   :  { %v449_v13 = vsel %vm441_vm1, %v445_v11, %v436_v7 }
 0x44e   :  { %453 = vst [vmem:[#allocation7 + $0x18] sm:$0xff] %v449_v13  ;;  %v448_v14 = vsel %vm441_vm1, %v444_v12, %v431_v10 }
 0x44f   :  { %452 = vst [vmem:[#allocation7 + $0x10] sm:$0xff] %v448_v14 }
 0x450   :  { %792 = shalt.err (!%p789_p6)
}
 0x451   :  { %s793_s13 = scalar_lea.hbm %s883_s2, 512 }
 0x452   :  { %p794_p7 = scmp.ne.s32.totalorder %s883_s2, %s793_s13  ;;  %p797_p8 = scmp.lt.u32.totalorder %s793_s13, %s883_s2 }
 0x454   :  { %p799_p9 = pnand %p797_p8, %p794_p7 }
 0x456   :  { %802 = shalt.err (!%p799_p9)
}
 0x457   :  { %465 = dma.vmem_to_hbm [thread:$0]  %s460_s9, 512, %s883_s2, [#allocation4], %s810_s19, %s810_s19, %s811_s20  }
 0x458   :  { %807 = dma.done.wait [#allocation4], 512  }
 0x459   :  { %808 = vsyncadd [#allocation4], 4294966784 }
 0x45a   :  { %469 = vsyncpa [#allocation3], 1 }
 0x45b   :  { %470 = vsyncpa [#allocation6], 1 }
 0x45c   :  { %471 = vsyncpa [#allocation4], 1 }

</bundles_post_ra>
